<compile_context>
chip_gen: v7x
topology: tpu7x:2x2x1
jax: 0.10.0
libtpu: 0.0.40
codegen_flags: <defaults>
</compile_context>

<pallas_src>
import jax
import jax.numpy as jnp
from jax.experimental import pallas as pl
from jax.experimental.pallas import tpu as pltpu


def _round_up(x, m):
    return ((x + m - 1) // m) * m


def mlp_kernel(x_ref, w1_ref, b1_ref, w2_ref, b2_ref, w3_ref, b3_ref, o_ref):
    # Layer 1: Linear(num_features, 64) + ReLU   (f32 MXU, f32 accumulate)
    h1 = jnp.dot(x_ref[...], w1_ref[...], preferred_element_type=jnp.float32)
    h1 = jnp.maximum(h1 + b1_ref[...], 0.0)
    # Layer 2: Linear(64, 32) + ReLU
    h2 = jnp.dot(h1, w2_ref[...], preferred_element_type=jnp.float32)
    h2 = jnp.maximum(h2 + b2_ref[...], 0.0)
    # Layer 3: Linear(32, num_classes)
    out = jnp.dot(h2, w3_ref[...], preferred_element_type=jnp.float32)
    o_ref[...] = (out + b3_ref[...]).astype(o_ref.dtype)


def mlp_forward(x, w1, b1, w2, b2, w3, b3, *, tb=1024, min_grid_steps=2):
    batch, num_features = x.shape
    h1_dim = w1.shape[1]
    h2_dim = w2.shape[1]
    num_classes = w3.shape[1]
    f32 = jnp.float32

    # Biases as (1, out_dim) rows for in-kernel broadcasting.
    b1r = b1.reshape(1, h1_dim).astype(f32)
    b2r = b2.reshape(1, h2_dim).astype(f32)
    b3r = b3.reshape(1, num_classes).astype(f32)

    # Batch tiling: tb rows per grid step (multiple of 8 for f32 sublanes).
    # Cap tb so the grid has >= min_grid_steps steps (when batch allows), so a
    # v7x megacore can split batch tiles across its 2 TensorCores.
    b8 = _round_up(batch, 8)
    tb_cap = max(8, _round_up(pl.cdiv(b8, min_grid_steps), 8))
    tb = max(8, min(_round_up(tb, 8), tb_cap))
    b_p = _round_up(batch, tb)
    grid = (b_p // tb,)

    # Only the batch dim is padded (zeros); feature dim stays at its true size.
    # Padded rows produce ReLU(bias) garbage in the padded output region and
    # are sliced off below — never reduce over the padded slab directly.
    if b_p != batch:
        xp = jnp.zeros((b_p, num_features), f32).at[:batch, :].set(x.astype(f32))
    else:
        xp = x.astype(f32)

    # Weights/biases: one full block, same index every grid step -> VMEM-resident.
    resident = lambda shape: pl.BlockSpec(shape, lambda i: (0, 0))

    flops = 2 * b_p * (num_features * h1_dim + h1_dim * h2_dim + h2_dim * num_classes)
    bytes_accessed = 4 * (
        xp.size
        + w1.size + w2.size + w3.size
        + b1r.size + b2r.size + b3r.size
        + b_p * num_classes
    )

    out_p = pl.pallas_call(
        mlp_kernel,
        out_shape=jax.ShapeDtypeStruct((b_p, num_classes), f32),
        grid=grid,
        in_specs=[
            pl.BlockSpec((tb, num_features), lambda i: (i, 0)),
            resident((num_features, h1_dim)), resident((1, h1_dim)),
            resident((h1_dim, h2_dim)), resident((1, h2_dim)),
            resident((h2_dim, num_classes)), resident((1, num_classes)),
        ],
        out_specs=pl.BlockSpec((tb, num_classes), lambda i: (i, 0)),
        compiler_params=pltpu.CompilerParams(
            # batch tiles are independent -> shard across TCs on v7x
            dimension_semantics=("parallel",),
        ),
        cost_estimate=pl.CostEstimate(
            flops=flops, bytes_accessed=bytes_accessed, transcendentals=0
        ),
    )(xp, w1.astype(f32), b1r, w2.astype(f32), b2r, w3.astype(f32), b3r)

    # Slice off batch padding (class dim is already unpadded).
    return out_p[:batch, :] if b_p != batch else out_p


def init_linear(key, in_dim, out_dim):
    # Deterministic init mimicking PyTorch nn.Linear: U(-1/sqrt(fan_in), 1/sqrt(fan_in))
    kw, kb = jax.random.split(key)
    bound = 1.0 / jnp.sqrt(jnp.float32(in_dim))
    w = jax.random.uniform(kw, (in_dim, out_dim), jnp.float32, -bound, bound)
    b = jax.random.uniform(kb, (1, out_dim), jnp.float32, -bound, bound)
    return w, b


if __name__ == "__main__":
    num_features = 32
    num_classes = 10
    batch = 100  # not a tile multiple: exercises batch padding + the >=2-step grid

    key = jax.random.PRNGKey(0)
    kx, k1, k2, k3 = jax.random.split(key, 4)

    x = jax.random.normal(kx, (batch, num_features), jnp.float32)
    w1, b1 = init_linear(k1, num_features, 64)
    w2, b2 = init_linear(k2, 64, 32)
    w3, b3 = init_linear(k3, 32, num_classes)

    out = jax.jit(mlp_forward)(x, w1, b1, w2, b2, w3, b3)
    out = jax.block_until_ready(out)

    # Reference check in plain JAX f32 (same math as the PyTorch forward).
    h = jnp.maximum(x @ w1 + b1, 0.0)
    h = jnp.maximum(h @ w2 + b2, 0.0)
    ref = h @ w3 + b3

    assert out.shape == (batch, num_classes)
    # Both sides are f32; small tolerance covers MXU pass-precision differences
    # between the Pallas dot and XLA's default f32 matmul.
    assert jnp.allclose(out, ref, atol=1e-2, rtol=1e-2), float(jnp.max(jnp.abs(out - ref)))

    print("KERNEL_OK")
</pallas_src>

<mosaic_0001>
module attributes {stable_mosaic.version = 11 : i64} {
  func.func @mlp_kernel(%arg0: i32, %arg1: memref<56x32xf32, #tpu.memory_space<vmem>>, %arg2: memref<32x64xf32, #tpu.memory_space<vmem>>, %arg3: memref<1x64xf32, #tpu.memory_space<vmem>>, %arg4: memref<64x32xf32, #tpu.memory_space<vmem>>, %arg5: memref<1x32xf32, #tpu.memory_space<vmem>>, %arg6: memref<32x10xf32, #tpu.memory_space<vmem>>, %arg7: memref<1x10xf32, #tpu.memory_space<vmem>>, %arg8: memref<56x10xf32, #tpu.memory_space<vmem>>) attributes {dimension_semantics = [#tpu.dimension_semantics<parallel>], iteration_bounds = array<i64: 2>, scalar_prefetch = 0 : i64, scratch_operands = 0 : i64, tpu.core_type = #tpu.core_type<tc>, window_params = [{transform_indices = @transform_0, window_bounds = array<i64: 56, 32>}, {pipeline_mode = #tpu.pipeline_mode<synchronous>, transform_indices = @transform_1, window_bounds = array<i64: 32, 64>}, {pipeline_mode = #tpu.pipeline_mode<synchronous>, transform_indices = @transform_2, window_bounds = array<i64: 1, 64>}, {pipeline_mode = #tpu.pipeline_mode<synchronous>, transform_indices = @transform_3, window_bounds = array<i64: 64, 32>}, {pipeline_mode = #tpu.pipeline_mode<synchronous>, transform_indices = @transform_4, window_bounds = array<i64: 1, 32>}, {pipeline_mode = #tpu.pipeline_mode<synchronous>, transform_indices = @transform_5, window_bounds = array<i64: 32, 10>}, {pipeline_mode = #tpu.pipeline_mode<synchronous>, transform_indices = @transform_6, window_bounds = array<i64: 1, 10>}, {transform_indices = @transform_7, window_bounds = array<i64: 56, 10>}]} {
    %c0 = arith.constant 0 : index
    %c0_0 = arith.constant 0 : index
    %0 = vector.load %arg1[%c0, %c0_0] : memref<56x32xf32, #tpu.memory_space<vmem>>, vector<56x32xf32>
    %c0_1 = arith.constant 0 : index
    %c0_2 = arith.constant 0 : index
    %1 = vector.load %arg2[%c0_1, %c0_2] : memref<32x64xf32, #tpu.memory_space<vmem>>, vector<32x64xf32>
    %cst = arith.constant dense<0.000000e+00> : vector<56x64xf32>
    %2 = tpu.matmul %0, %1, %cst {dimension_numbers = #tpu.dot_dimension_numbers<[1], [0], [0], [1], [0, 0, 1, 1], [], []>} : vector<56x32xf32>, vector<32x64xf32>, vector<56x64xf32> -> vector<56x64xf32>
    %c0_3 = arith.constant 0 : index
    %c0_4 = arith.constant 0 : index
    %3 = vector.load %arg3[%c0_3, %c0_4] : memref<1x64xf32, #tpu.memory_space<vmem>>, vector<1x64xf32>
    %4 = vector.broadcast %3 : vector<1x64xf32> to vector<56x64xf32>
    %5 = arith.addf %2, %4 : vector<56x64xf32>
    %cst_5 = arith.constant 0.000000e+00 : f32
    %6 = vector.broadcast %cst_5 : f32 to vector<56x64xf32>
    %7 = arith.maximumf %5, %6 : vector<56x64xf32>
    %c0_6 = arith.constant 0 : index
    %c0_7 = arith.constant 0 : index
    %8 = vector.load %arg4[%c0_6, %c0_7] : memref<64x32xf32, #tpu.memory_space<vmem>>, vector<64x32xf32>
    %cst_8 = arith.constant dense<0.000000e+00> : vector<56x32xf32>
    %9 = tpu.matmul %7, %8, %cst_8 {dimension_numbers = #tpu.dot_dimension_numbers<[1], [0], [0], [1], [0, 0, 1, 1], [], []>} : vector<56x64xf32>, vector<64x32xf32>, vector<56x32xf32> -> vector<56x32xf32>
    %c0_9 = arith.constant 0 : index
    %c0_10 = arith.constant 0 : index
    %10 = vector.load %arg5[%c0_9, %c0_10] : memref<1x32xf32, #tpu.memory_space<vmem>>, vector<1x32xf32>
    %11 = vector.broadcast %10 : vector<1x32xf32> to vector<56x32xf32>
    %12 = arith.addf %9, %11 : vector<56x32xf32>
    %cst_11 = arith.constant 0.000000e+00 : f32
    %13 = vector.broadcast %cst_11 : f32 to vector<56x32xf32>
    %14 = arith.maximumf %12, %13 : vector<56x32xf32>
    %c0_12 = arith.constant 0 : index
    %c0_13 = arith.constant 0 : index
    %15 = vector.load %arg6[%c0_12, %c0_13] : memref<32x10xf32, #tpu.memory_space<vmem>>, vector<32x10xf32>
    %cst_14 = arith.constant dense<0.000000e+00> : vector<56x10xf32>
    %16 = tpu.matmul %14, %15, %cst_14 {dimension_numbers = #tpu.dot_dimension_numbers<[1], [0], [0], [1], [0, 0, 1, 1], [], []>} : vector<56x32xf32>, vector<32x10xf32>, vector<56x10xf32> -> vector<56x10xf32>
    %c0_15 = arith.constant 0 : index
    %c0_16 = arith.constant 0 : index
    %17 = vector.load %arg7[%c0_15, %c0_16] : memref<1x10xf32, #tpu.memory_space<vmem>>, vector<1x10xf32>
    %18 = vector.broadcast %17 : vector<1x10xf32> to vector<56x10xf32>
    %19 = arith.addf %16, %18 : vector<56x10xf32>
    %c0_17 = arith.constant 0 : index
    %c0_18 = arith.constant 0 : index
    %20 = vector.load %arg8[%c0_17, %c0_18] : memref<56x10xf32, #tpu.memory_space<vmem>>, vector<56x10xf32>
    tpu.vector_store %arg8[%c0_17, %c0_18], %19 {strides = array<i32>} : memref<56x10xf32, #tpu.memory_space<vmem>>, vector<56x10xf32>,
    return
  }
  func.func @transform_0(%arg0: i32) -> (i32, i32) {
    %c0_i32 = arith.constant 0 : i32
    %c0_i32_0 = arith.constant 0 : i32
    return %arg0, %c0_i32 : i32, i32
  }
  func.func @transform_1(%arg0: i32) -> (i32, i32) {
    %c0_i32 = arith.constant 0 : i32
    %c0_i32_0 = arith.constant 0 : i32
    %c0_i32_1 = arith.constant 0 : i32
    return %c0_i32, %c0_i32_0 : i32, i32
  }
  func.func @transform_2(%arg0: i32) -> (i32, i32) {
    %c0_i32 = arith.constant 0 : i32
    %c0_i32_0 = arith.constant 0 : i32
    %c0_i32_1 = arith.constant 0 : i32
    return %c0_i32, %c0_i32_0 : i32, i32
  }
  func.func @transform_3(%arg0: i32) -> (i32, i32) {
    %c0_i32 = arith.constant 0 : i32
    %c0_i32_0 = arith.constant 0 : i32
    %c0_i32_1 = arith.constant 0 : i32
    return %c0_i32, %c0_i32_0 : i32, i32
  }
  func.func @transform_4(%arg0: i32) -> (i32, i32) {
    %c0_i32 = arith.constant 0 : i32
    %c0_i32_0 = arith.constant 0 : i32
    %c0_i32_1 = arith.constant 0 : i32
    return %c0_i32, %c0_i32_0 : i32, i32
  }
  func.func @transform_5(%arg0: i32) -> (i32, i32) {
    %c0_i32 = arith.constant 0 : i32
    %c0_i32_0 = arith.constant 0 : i32
    %c0_i32_1 = arith.constant 0 : i32
    return %c0_i32, %c0_i32_0 : i32, i32
  }
  func.func @transform_6(%arg0: i32) -> (i32, i32) {
    %c0_i32 = arith.constant 0 : i32
    %c0_i32_0 = arith.constant 0 : i32
    %c0_i32_1 = arith.constant 0 : i32
    return %c0_i32, %c0_i32_0 : i32, i32
  }
  func.func @transform_7(%arg0: i32) -> (i32, i32) {
    %c0_i32 = arith.constant 0 : i32
    %c0_i32_0 = arith.constant 0 : i32
    return %arg0, %c0_i32 : i32, i32
  }
}

</mosaic_0001>

<bundles_post_ra>
// kernel: mlp_forward.1
= control target key start
LH: loop header
LB: loop body
LE: loop exit
PB: predicated region body
PF: predicated region fallthrough
CT: control target
= control target key end

     0   :  { %s1024_s24 = smov 0   ;;  %s1194_s0 = inlined_call_operand.vmem [shape: f32[112,32], index: 0, kind: input, shape index: {}]   ;;  %s1195_s1 = inlined_call_operand.vmem [shape: f32[32,64], index: 1, kind: input, shape index: {}]   ;;  %s1196_s2 = inlined_call_operand.vmem [shape: f32[1,64], index: 2, kind: input, shape index: {}]   ;;  %s1197_s3 = inlined_call_operand.vmem [shape: f32[64,32], index: 3, kind: input, shape index: {}]   ;;  %s1198_s4 = inlined_call_operand.vmem [shape: f32[1,32], index: 4, kind: input, shape index: {}]   ;;  %s1199_s5 = inlined_call_operand.vmem [shape: f32[32,10], index: 5, kind: input, shape index: {}]   ;;  %s1200_s6 = inlined_call_operand.vmem [shape: f32[1,10], index: 6, kind: input, shape index: {}]   ;;  %s1201_s7 = inlined_call_operand.vmem [shape: f32[112,10], index: 7, kind: output, shape index: {}]  }
   0x1 LB: > { %s769_s25 = sadd.s32 4294967295, %s979_s24   ;;  %p773_p0 = scmp.ge.s32.totalorder %s979_s24, 1  ;;  %s979_s24 = sphi %s1024_s24, %s17_s24  }
   0x2   : > { %p238_p1 = scmp.lt.s32.totalorder %s979_s24, 3 }
   0x4   : > { %p239_p2 = pnand %p773_p0, %p238_p1 }
   0x5   : > { %v289_v0 = vld [vmem:[%s1195_s1] sm:$0xff] (!%p239_p2)  ;;  %v290_v1 = vld [vmem:[%s1195_s1 + $0x8] sm:$0xff] (!%p239_p2)  ;;  %v291_v2 = vld [vmem:[%s1195_s1 + $0x10] sm:$0xff] (!%p239_p2)  ;;  %v981_v3 = vmov (!%p239_p2), 0.0|0.0   ;;  %vm982_vm0 = vmmov (!%p239_p2), 0   ;;  %v983_v6 = vmov (!%p239_p2), 0.0  }
   0x6   : > { %242 = sbr.rel (%p239_p2) target bundleno = 688 (0x2b0), region = 48  ;;  %934 = vmatprep.subr.bf16.mxu0 (!%p239_p2), %v981_v3  ;;  %v935_v4 = vpack.c.bf16 (!%p239_p2), %v290_v1, %v289_v0  ;;  %v292_v5 = vld [vmem:[%s1195_s1 + $0x18] sm:$0xff] (!%p239_p2)  ;;  %847 = vmatprep.mubr.msk.f32.mxu0 (!%p239_p2), %vm982_vm0, %v983_v6  ;;  %v429_v8 = vld [vmem:[%s1197_s3] sm:$0xff] (!%p239_p2)  ;;  %v430_v9 = vld [vmem:[%s1197_s3 + $0x8] sm:$0xff] (!%p239_p2)  ;;  %vm300_vm1 = vcmask (!%p239_p2), 261120   ;;  %vm444_vm2 = vcmask (!%p239_p2), 523264  }
   0x7   : > { %s270_s11 = smul.u32 (!%p239_p2), 7, %s769_s25  ;;  %958 = vmatprep.subr.bf16.mxu1 (!%p239_p2), %v981_v3  ;;  %856 = vmatprep.mubr.msk.f32.mxu1 (!%p239_p2), %vm982_vm0, %v983_v6  ;;  %v938_v7 = vpack.c.bf16 (!%p239_p2), %v292_v5, %v291_v2  ;;  %v941_v10 = vpack.c.bf16 (!%p239_p2), %v430_v9, %v429_v8  ;;  %v431_v12 = vld [vmem:[%s1197_s3 + $0x10] sm:$0xff] (!%p239_p2)  ;;  %v432_v13 = vld [vmem:[%s1197_s3 + $0x18] sm:$0xff] (!%p239_p2)  ;;  %v433_v18 = vld [vmem:[%s1197_s3 + $0x20] sm:$0xff] (!%p239_p2)  ;;  %vm705_vm3 = vcmask (!%p239_p2), 80896  }
   0x8   : > { %936 = vmatpush3.bf16.msra.mxu0 (!%p239_p2), %v935_v4  ;;  %960 = vmatpush3.bf16.msra.mxu1 (!%p239_p2), %v935_v4  ;;  %v944_v17 = vpack.c.bf16 (!%p239_p2), %v432_v13, %v431_v12  ;;  %v434_v19 = vld [vmem:[%s1197_s3 + $0x28] sm:$0xff] (!%p239_p2)  ;;  %v435_v24 = vld [vmem:[%s1197_s3 + $0x30] sm:$0xff] (!%p239_p2)  ;;  %v436_v25 = vld [vmem:[%s1197_s3 + $0x38] sm:$0xff] (!%p239_p2) }
   0x9   : > { %p271_p3 = scmp.lt.s32.totalorder (!%p239_p2), %s270_s11, 13  ;;  %937 = vmatprep.subr.bf16.mxu0 (!%p239_p2), %v981_v3  ;;  %959 = vmatprep.subr.bf16.mxu1 (!%p239_p2), %v981_v3  ;;  %v947_v22 = vpack.c.bf16 (!%p239_p2), %v434_v19, %v433_v18  ;;  %v950_v26 = vpack.c.bf16 (!%p239_p2), %v436_v25, %v435_v24  ;;  %v573_v27 = vld [vmem:[%s1199_s5] sm:$0xff] (!%p239_p2)  ;;  %v574_v28 = vld [vmem:[%s1199_s5 + $0x8] sm:$0xff] (!%p239_p2)  ;;  %v575_v29 = vld [vmem:[%s1199_s5 + $0x10] sm:$0xff] (!%p239_p2) }
   0xa   : > { %v953_v30 = vpack.c.bf16 (!%p239_p2), %v574_v28, %v573_v27  ;;  %v576_v31 = vld [vmem:[%s1199_s5 + $0x18] sm:$0xff] (!%p239_p2)  ;;  %v776_v33 = vld [vmem:[%s1196_s2] ss:$0 sm:$0xff] (!%p239_p2) }
   0xb   : > { %v956_v32 = vpack.c.bf16 (!%p239_p2), %v576_v31, %v575_v29  ;;  %v784_v62 = vld [vmem:[%s1198_s4] ss:$0 sm:$0xff] (!%p239_p2) }
   0xc   : > { %939 = vmatpush3.bf16.msra.mxu0 (!%p239_p2), %v938_v7  ;;  %961 = vmatpush3.bf16.msra.mxu1 (!%p239_p2), %v938_v7  ;;  %v792_v28 = vld [vmem:[%s1200_s6] ss:$0 sm:$0xff] (!%p239_p2) }
   0xd   : > { %s1203_s11 = smov (!%p271_p3, %s270_s11), 13  ;;  %940 = vmatprep.subr.bf16.mxu1 %v981_v3  ;;  %952 = vmatprep.subr.bf16.mxu0 %v981_v3 }
   0xe   : > { %s774_s16 = sshll.u32 %s1203_s11, 3 }
   0xf   : > { %s1066_s19 = scalar_lea.vmem %s1194_s0, %s774_s16  ;;  %s280_s29 = scalar_lea.vmem %s1201_s7, %s774_s16 }
  0x10   : > { %v282_v11 = vld [vmem:[%s1066_s19] sm:$0xff]  ;;  %v285_v14 = vld [vmem:[%s1066_s19 + $0x18] sm:$0xff]  ;;  %v283_v15 = vld [vmem:[%s1066_s19 + $0x8] sm:$0xff] }
  0x11   : > { %848 = vmatmul.mubr.msk.f32.vlgmr.msra.gmra.mrb[0].mxu0 %vm300_vm1, %v282_v11  ;;  %857 = vmatmul.mubr.msk.f32.vlgmr.msra.gmra.mrb[0].mxu1 %vm300_vm1, %v285_v14  ;;  %v286_v16 = vld [vmem:[%s1066_s19 + $0x20] sm:$0xff]  ;;  %v284_v20 = vld [vmem:[%s1066_s19 + $0x10] sm:$0xff]  ;;  %v287_v21 = vld [vmem:[%s1066_s19 + $0x28] sm:$0xff] }
  0x12   : > { %850 = vmatprep.mubr.msk.f32.mxu0 %vm982_vm0, %v983_v6  ;;  %859 = vmatprep.mubr.msk.f32.mxu1 %vm982_vm0, %v983_v6  ;;  %v288_v23 = vld [vmem:[%s1066_s19 + $0x30] sm:$0xff] }
  0x13   : > { %942 = vmatpush3.bf16.msra.mxu1 %v941_v10  ;;  %954 = vmatpush3.bf16.msra.mxu0 %v953_v30 }
  0x14   : > { %943 = vmatprep.subr.bf16.mxu1 %v981_v3  ;;  %955 = vmatprep.subr.bf16.mxu0 %v981_v3 }
  0x15   : > { %851 = vmatmul.mubr.msk.f32.gmra.mrb[2].mxu0 %vm300_vm1, %v283_v15  ;;  %860 = vmatmul.mubr.msk.f32.gmra.mrb[2].mxu1 %vm300_vm1, %v286_v16 }
  0x16   : > { %853 = vmatprep.mubr.msk.f32.mxu0 %vm982_vm0, %v983_v6  ;;  %862 = vmatprep.mubr.msk.f32.mxu1 %vm982_vm0, %v983_v6 }
  0x17   : > { %945 = vmatpush3.bf16.msra.mxu1 %v944_v17  ;;  %957 = vmatpush3.bf16.msra.mxu0 %v956_v32 }
  0x18   : > { %946 = vmatprep.subr.bf16.mxu1 %v981_v3 }
  0x19   : > { %854 = vmatmul.mubr.msk.f32.gmra.mrb[4].mxu0 %vm300_vm1, %v284_v20  ;;  %863 = vmatmul.mubr.msk.f32.gmra.mrb[4].mxu1 %vm300_vm1, %v287_v21 }
  0x1a   : > { %913 = vmatprep.mubr.msk.f32.mxu0 %vm982_vm0, %v983_v6  ;;  %865 = vmatprep.mubr.msk.f32.mxu1 %vm982_vm0, %v983_v6 }
  0x1b   : > { %948 = vmatpush3.bf16.msra.mxu1 %v947_v22 }
  0x1c   : > { %949 = vmatprep.subr.bf16.mxu1 %v981_v3 }
  0x1d   : > { %866 = vmatmul.mubr.msk.f32.gmra.mrb[6].mxu1 %vm300_vm1, %v288_v23 }
  0x1e   : > { %884 = vmatprep.mubr.msk.f32.mxu1 %vm982_vm0, %v983_v6 }
  0x1f   : > { %951 = vmatpush3.bf16.msra.mxu1 %v950_v26 }
  0xe4   : > { %v388_v34 = vpop.f32.mrb[0].mxu0  ;;  %v403_v37 = vpop.f32.mrb[0].mxu1 }
  0xe5   : > { %v389_v35 = vadd.f32 %v776_v33, %v388_v34  ;;  %v849_v36 = vpop.f32.mrb[1].mxu0  ;;  %v858_v38 = vpop.f32.mrb[1].mxu1  ;;  %v404_v49 = vadd.f32 %v776_v33, %v403_v37 }
  0xe7   : > { %v422_v39 = vmax.f32 %v389_v35, 0.0  ;;  %v425_v53 = vmax.f32 %v404_v49, 0.0 }
  0xe8   : > { %v393_v40 = vpop.f32.mrb[2].mxu0  ;;  %v408_v43 = vpop.f32.mrb[2].mxu1 }
  0xe9   : > { %v394_v41 = vadd.f32 %v776_v33, %v393_v40  ;;  %v852_v42 = vpop.f32.mrb[3].mxu0  ;;  %885 = vmatmul.mubr.msk.f32.vlgmr.msra.gmra.mrb[8].mxu1 %vm444_vm2, %v422_v39  ;;  %v861_v44 = vpop.f32.mrb[3].mxu1  ;;  %v409_v54 = vadd.f32 %v776_v33, %v408_v43 }
  0xea   : > { %887 = vmatprep.mubr.msk.f32.mxu1 %vm982_vm0, %v983_v6 }
  0xeb   : > { %v423_v45 = vmax.f32 %v394_v41, 0.0  ;;  %v426_v57 = vmax.f32 %v409_v54, 0.0 }
  0xec   : > { %v398_v46 = vpop.f32.mrb[4].mxu0  ;;  %v413_v50 = vpop.f32.mrb[4].mxu1 }
  0xed   : > { %v399_v47 = vadd.f32 %v776_v33, %v398_v46  ;;  %v855_v48 = vpop.f32.mrb[5].mxu0  ;;  %888 = vmatmul.mubr.msk.f32.gmra.mrb[10].mxu1 %vm444_vm2, %v423_v45  ;;  %v864_v51 = vpop.f32.mrb[5].mxu1  ;;  %v414_v58 = vadd.f32 %v776_v33, %v413_v50 }
  0xee   : > { %890 = vmatprep.mubr.msk.f32.mxu1 %vm982_vm0, %v983_v6 }
  0xef   : > { %v424_v52 = vmax.f32 %v399_v47, 0.0  ;;  %v427_v59 = vmax.f32 %v414_v58, 0.0 }
  0xf0   : > { %v418_v55 = vpop.f32.mrb[6].mxu1 }
  0xf1   : > { %891 = vmatmul.mubr.msk.f32.gmra.mrb[12].mxu1 %vm444_vm2, %v424_v52  ;;  %v867_v56 = vpop.f32.mrb[7].mxu1  ;;  %v419_v60 = vadd.f32 %v776_v33, %v418_v55 }
  0xf2   : > { %893 = vmatprep.mubr.msk.f32.mxu1 %vm982_vm0, %v983_v6 }
  0xf3   : > { %v428_v61 = vmax.f32 %v419_v60, 0.0 }
  0xf5   : > { %894 = vmatmul.mubr.msk.f32.gmra.mrb[14].mxu1 %vm444_vm2, %v425_v53 }
  0xf6   : > { %896 = vmatprep.mubr.msk.f32.mxu1 %vm982_vm0, %v983_v6 }
  0xf9   : > { %897 = vmatmul.mubr.msk.f32.gmra.mrb[16].mxu1 %vm444_vm2, %v426_v57 }
  0xfa   : > { %899 = vmatprep.mubr.msk.f32.mxu1 %vm982_vm0, %v983_v6 }
  0xfd   : > { %900 = vmatmul.mubr.msk.f32.gmra.mrb[18].mxu1 %vm444_vm2, %v427_v59 }
  0xfe   : > { %902 = vmatprep.mubr.msk.f32.mxu1 %vm982_vm0, %v983_v6 }
 0x101   : > { %903 = vmatmul.mubr.msk.f32.gmra.mrb[20].mxu1 %vm444_vm2, %v428_v61 }
 0x1bc   : > { %v532_v63 = vpop.f32.mrb[8].mxu1 }
 0x1bd   : > { %v533_v0 = vadd.f32 %v784_v62, %v532_v63  ;;  %v886_v1 = vpop.f32.mrb[9].mxu1 }
 0x1bf   : > { %v566_v2 = vmax.f32 %v533_v0, 0.0 }
 0x1c0   : > { %v537_v3 = vpop.f32.mrb[10].mxu1 }
 0x1c1   : > { %v538_v4 = vadd.f32 %v784_v62, %v537_v3  ;;  %v889_v5 = vpop.f32.mrb[11].mxu1  ;;  %914 = vmatmul.mubr.msk.f32.vlgmr.msra.gmra.mrb[6].mxu0 %vm300_vm1, %v566_v2 }
 0x1c2   : > { %916 = vmatprep.mubr.msk.f32.mxu0 %vm982_vm0, %v983_v6 }
 0x1c3   : > { %v567_v7 = vmax.f32 %v538_v4, 0.0 }
 0x1c4   : > { %v542_v8 = vpop.f32.mrb[12].mxu1 }
 0x1c5   : > { %v543_v9 = vadd.f32 %v784_v62, %v542_v8  ;;  %v892_v10 = vpop.f32.mrb[13].mxu1  ;;  %917 = vmatmul.mubr.msk.f32.gmra.mrb[8].mxu0 %vm300_vm1, %v567_v7 }
 0x1c6   : > { %919 = vmatprep.mubr.msk.f32.mxu0 %vm982_vm0, %v983_v6 }
 0x1c7   : > { %v568_v11 = vmax.f32 %v543_v9, 0.0 }
 0x1c8   : > { %v547_v12 = vpop.f32.mrb[14].mxu1 }
 0x1c9   : > { %v548_v13 = vadd.f32 %v784_v62, %v547_v12  ;;  %v895_v14 = vpop.f32.mrb[15].mxu1  ;;  %920 = vmatmul.mubr.msk.f32.gmra.mrb[10].mxu0 %vm300_vm1, %v568_v11 }
 0x1ca   : > { %922 = vmatprep.mubr.msk.f32.mxu0 %vm982_vm0, %v983_v6 }
 0x1cb   : > { %v569_v15 = vmax.f32 %v548_v13, 0.0 }
 0x1cc   : > { %v552_v16 = vpop.f32.mrb[16].mxu1 }
 0x1cd   : > { %v553_v17 = vadd.f32 %v784_v62, %v552_v16  ;;  %v898_v18 = vpop.f32.mrb[17].mxu1  ;;  %923 = vmatmul.mubr.msk.f32.gmra.mrb[12].mxu0 %vm300_vm1, %v569_v15 }
 0x1ce   : > { %925 = vmatprep.mubr.msk.f32.mxu0 %vm982_vm0, %v983_v6 }
 0x1cf   : > { %v570_v19 = vmax.f32 %v553_v17, 0.0 }
 0x1d0   : > { %v557_v20 = vpop.f32.mrb[18].mxu1 }
 0x1d1   : > { %v558_v21 = vadd.f32 %v784_v62, %v557_v20  ;;  %v901_v22 = vpop.f32.mrb[19].mxu1  ;;  %926 = vmatmul.mubr.msk.f32.gmra.mrb[14].mxu0 %vm300_vm1, %v570_v19 }
 0x1d2   : > { %928 = vmatprep.mubr.msk.f32.mxu0 %vm982_vm0, %v983_v6 }
 0x1d3   : > { %v571_v23 = vmax.f32 %v558_v21, 0.0 }
 0x1d4   : > { %v562_v24 = vpop.f32.mrb[20].mxu1 }
 0x1d5   : > { %v563_v25 = vadd.f32 %v784_v62, %v562_v24  ;;  %v904_v26 = vpop.f32.mrb[21].mxu1  ;;  %929 = vmatmul.mubr.msk.f32.gmra.mrb[16].mxu0 %vm300_vm1, %v571_v23 }
 0x1d6   : > { %931 = vmatprep.mubr.msk.f32.mxu0 %vm982_vm0, %v983_v6 }
 0x1d7   : > { %v572_v27 = vmax.f32 %v563_v25, 0.0 }
 0x1d9   : > { %932 = vmatmul.mubr.msk.f32.gmra.mrb[18].mxu0 %vm300_vm1, %v572_v27 }
 0x294   : > { %v671_v29 = vpop.f32.mrb[6].mxu0 }
 0x295   : > { %v672_v30 = vadd.f32 %v792_v28, %v671_v29  ;;  %v915_v31 = vpop.f32.mrb[7].mxu0 }
 0x297   : > { %706 = vst.msk [vmem:[%s280_s29] sm:$0xff] %vm705_vm3, %v672_v30 }
 0x298   : > { %v676_v32 = vpop.f32.mrb[8].mxu0 }
 0x299   : > { %v677_v6 = vadd.f32 %v792_v28, %v676_v32  ;;  %v918_v33 = vpop.f32.mrb[9].mxu0 }
 0x29b   : > { %707 = vst.msk [vmem:[%s280_s29 + $0x8] sm:$0xff] %vm705_vm3, %v677_v6 }
 0x29c   : > { %v681_v34 = vpop.f32.mrb[10].mxu0 }
 0x29d   : > { %v682_v35 = vadd.f32 %v792_v28, %v681_v34  ;;  %v921_v36 = vpop.f32.mrb[11].mxu0 }
 0x29f   : > { %708 = vst.msk [vmem:[%s280_s29 + $0x10] sm:$0xff] %vm705_vm3, %v682_v35 }
 0x2a0   : > { %v686_v37 = vpop.f32.mrb[12].mxu0 }
 0x2a1   : > { %v687_v38 = vadd.f32 %v792_v28, %v686_v37  ;;  %v924_v39 = vpop.f32.mrb[13].mxu0 }
 0x2a3   : > { %709 = vst.msk [vmem:[%s280_s29 + $0x18] sm:$0xff] %vm705_vm3, %v687_v38 }
 0x2a4   : > { %v691_v40 = vpop.f32.mrb[14].mxu0 }
 0x2a5   : > { %v692_v41 = vadd.f32 %v792_v28, %v691_v40  ;;  %v927_v42 = vpop.f32.mrb[15].mxu0 }
 0x2a7   : > { %710 = vst.msk [vmem:[%s280_s29 + $0x20] sm:$0xff] %vm705_vm3, %v692_v41 }
 0x2a8   : > { %v696_v43 = vpop.f32.mrb[16].mxu0 }
 0x2a9   : > { %v697_v44 = vadd.f32 %v792_v28, %v696_v43  ;;  %v930_v45 = vpop.f32.mrb[17].mxu0 }
 0x2ab   : > { %711 = vst.msk [vmem:[%s280_s29 + $0x28] sm:$0xff] %vm705_vm3, %v697_v44 }
 0x2ac   : > { %v701_v46 = vpop.f32.mrb[18].mxu0 }
 0x2ad   : > { %v702_v47 = vadd.f32 %v792_v28, %v701_v46  ;;  %v933_v48 = vpop.f32.mrb[19].mxu0 }
 0x2af   : > { %712 = vst.msk [vmem:[%s280_s29 + $0x30] sm:$0xff] %vm705_vm3, %v702_v47 }
 0x2b0 PF: > { %s17_s24 = sadd.s32 1, %s979_s24  }
 0x2b1   : > { %p14_p4 = scmp.ge.s32.totalorder %s17_s24, 4  }
 0x2b3   :  { %16 = sbr.rel (!%p14_p4) target bundleno = 1 (0x1), region = 78 }

</bundles_post_ra>
